<compile_context>
chip_gen: v6e
topology: v6e:2x2x1
jax: 0.10.0
libtpu: 0.0.40
codegen_flags: <defaults>
</compile_context>

<pallas_src>
import numpy as np
import jax
import jax.numpy as jnp
from jax.experimental import pallas as pl
from jax.experimental.pallas import tpu as pltpu

# ----------------------------------------------------------------- constants
POOL_SIZES = (1, 2, 3, 6)            # AdaptiveAvgPool2d target sizes
NUM_HEADS = 8                        # TransformerBlock(c, 8, 1)
BN_EPS = 1e-5
MXU_DTYPE = jnp.bfloat16             # MXU input dtype; accumulation stays f32
TILE_H_FALLBACK = 8                  # only used when a full image overflows VMEM
X_TILE_VMEM_BUDGET = 8 * 1024 * 1024
VMEM_LIMIT_BYTES = 48 * 1024 * 1024  # <= v7x 64 MiB physical VMEM

_GROUP_LEN = [s * s for s in POOL_SIZES]                           # 1, 4, 9, 36
_GROUP_PAD = [((l + 7) // 8) * 8 for l in _GROUP_LEN]              # 8, 8, 16, 40
_GROUP_START = [int(v) for v in np.cumsum([0] + _GROUP_PAD[:-1])]  # 0, 8, 16, 32
POOL_ROWS_PAD = int(sum(_GROUP_PAD))                               # 72
G_ROWS = int(sum(_GROUP_LEN))                                      # 50 branch rows
G_ROWS_USED = G_ROWS + 1                                           # + 1 bias row = 51
G_ROWS_PAD = 64                                                    # padded K for fuse matmul


# ----------------------------------------------------- host-built matrices
def _ceil_div(a, b):
    return -(-a // b)


def _adaptive_pool_matrix(n_out, n_in):
    """P[i, k] = 1/bin_size if k in bin i (PyTorch AdaptiveAvgPool bins)."""
    P = np.zeros((n_out, n_in), np.float32)
    for i in range(n_out):
        a = (i * n_in) // n_out
        b = _ceil_div((i + 1) * n_in, n_out)
        P[i, a:b] = 1.0 / (b - a)
    return P


def _upsample_matrix_1d(n_out, n_in):
    """Bilinear, align_corners=True interpolation weights (n_out, n_in)."""
    U = np.zeros((n_out, n_in), np.float32)
    if n_in == 1:
        U[:, 0] = 1.0
        return U
    for i in range(n_out):
        pos = i * (n_in - 1) / (n_out - 1) if n_out > 1 else 0.0
        lo = min(int(np.floor(pos)), n_in - 1)
        hi = min(lo + 1, n_in - 1)
        f = pos - lo
        U[i, lo] += 1.0 - f
        U[i, hi] += f
    return U


def _build_pool_matrix(H, W):
    """(POOL_ROWS_PAD, H*W): all four pooling grids stacked, groups 8-padded."""
    M = np.zeros((POOL_ROWS_PAD, H * W), np.float32)
    for gi, s in enumerate(POOL_SIZES):
        Ph = _adaptive_pool_matrix(s, H)
        Pw = _adaptive_pool_matrix(s, W)
        r0 = _GROUP_START[gi]
        M[r0:r0 + s * s] = np.kron(Ph, Pw)
    return M


def _build_upsample_matrix(H, W):
    """(H*W, G_ROWS_PAD): per-branch bilinear weights + a ones column for the
    fused output bias (bias lives in G row G_ROWS), zero-padded to G_ROWS_PAD."""
    cols = []
    for s in POOL_SIZES:
        Uh = _upsample_matrix_1d(H, s)
        Uw = _upsample_matrix_1d(W, s)
        cols.append(np.kron(Uh, Uw))                   # (H*W, s*s)
    cols.append(np.ones((H * W, 1), np.float32))       # bias column
    M = np.concatenate(cols, axis=1)                   # (H*W, 51)
    return np.pad(M, ((0, 0), (0, G_ROWS_PAD - M.shape[1])))


# ------------------------------------------------------------ Pallas kernels
def _pool_kernel_single(x_ref, mp_ref, w_ref, b_ref, feat_ref):
    """Whole image per step: pool matmul then one lane-dense conv+BN+ReLU."""
    h, w, c = x_ref.shape
    x2 = x_ref[...].reshape(h * w, c)
    acc = jnp.dot(mp_ref[...], x2, preferred_element_type=jnp.float32)   # (72, C)
    z = jnp.dot(acc.astype(MXU_DTYPE), w_ref[...],
                preferred_element_type=jnp.float32) + b_ref[...]
    feat_ref[...] = jnp.maximum(z, 0.0).astype(feat_ref.dtype)


def _pool_kernel_tiled(x_ref, mp_ref, w_ref, b_ref, feat_ref, acc_ref):
    """Row-tiled fallback: accumulate pooled sums, finalize on the last tile."""
    t = pl.program_id(1)
    th, w, c = x_ref.shape
    x2 = x_ref[...].reshape(th * w, c)
    part = jnp.dot(mp_ref[...], x2, preferred_element_type=jnp.float32)

    @pl.when(t == 0)
    def _init():
        acc_ref[...] = jnp.zeros_like(acc_ref)

    acc_ref[...] += part

    @pl.when(t == pl.num_programs(1) - 1)
    def _finalize():
        z = jnp.dot(acc_ref[...].astype(MXU_DTYPE), w_ref[...],
                    preferred_element_type=jnp.float32) + b_ref[...]
        feat_ref[...] = jnp.maximum(z, 0.0).astype(feat_ref.dtype)


def _fuse_kernel(x_ref, mup_ref, g_ref, wx_ref, o_ref):
    """relu(x_tile @ Wx + Mup_tile @ G) -- bias folded into G's last used row."""
    th, w, c = x_ref.shape
    x2 = x_ref[...].reshape(th * w, c)
    acc = jnp.dot(x2, wx_ref[...], preferred_element_type=jnp.float32)
    acc += jnp.dot(mup_ref[...], g_ref[...], preferred_element_type=jnp.float32)
    acc = jnp.maximum(acc, 0.0)
    o_ref[...] = acc.reshape(th, w, o_ref.shape[-1]).astype(o_ref.dtype)


# ------------------------------------------------------------ Pallas wrappers
def _row_tile(H, W, C, itemsize):
    """Full image per step when it fits the VMEM budget, else largest lane-dense
    row tile that does (keeps th*W a multiple of 128 for the (8,128) rule)."""
    if H * W * C * itemsize <= X_TILE_VMEM_BUDGET:
        return H
    for th in range(H, 0, -1):
        if H % th:
            continue
        if (th * W) % 128:
            continue
        if th * W * C * itemsize <= X_TILE_VMEM_BUDGET:
            return th
    return min(TILE_H_FALLBACK, H)


def _pool_branch_features(x_nhwc, mpool, w_all, b_all):
    N, H, W, C = x_nhwc.shape
    width = w_all.shape[1]                                # 4 * inter
    th = _row_tile(H, W, C, x_nhwc.dtype.itemsize)
    n_tiles = H // th

    cost = pl.CostEstimate(
        flops=int(N * (2 * POOL_ROWS_PAD * H * W * C + 2 * POOL_ROWS_PAD * C * width)),
        transcendentals=0,
        bytes_accessed=int(N * H * W * C * x_nhwc.dtype.itemsize
                           + POOL_ROWS_PAD * H * W * mpool.dtype.itemsize
                           + C * width * w_all.dtype.itemsize
                           + width * 4
                           + N * POOL_ROWS_PAD * width * 4))
    out_shape = jax.ShapeDtypeStruct((N, POOL_ROWS_PAD, width), jnp.float32)

    if n_tiles == 1:
        # TODO(synk): on v7x at batch=1 the second TensorCore is idle here; a
        # split-reduction leading grid axis would recover it.
        grid_spec = pltpu.PrefetchScalarGridSpec(
            num_scalar_prefetch=0,
            grid=(N,),
            in_specs=[pl.BlockSpec((None, H, W, C), lambda n: (n, 0, 0, 0)),
                      pl.BlockSpec((POOL_ROWS_PAD, H * W), lambda n: (0, 0)),
                      pl.BlockSpec((C, width), lambda n: (0, 0)),
                      pl.BlockSpec((1, width), lambda n: (0, 0))],
            out_specs=pl.BlockSpec((None, POOL_ROWS_PAD, width),
                                   lambda n: (n, 0, 0)))
        return pl.pallas_call(
            _pool_kernel_single, out_shape=out_shape, grid_spec=grid_spec,
            compiler_params=pltpu.CompilerParams(
                dimension_semantics=("parallel",),
                vmem_limit_bytes=VMEM_LIMIT_BYTES),
            cost_estimate=cost,
        )(x_nhwc, mpool, w_all, b_all)

    grid_spec = pltpu.PrefetchScalarGridSpec(
        num_scalar_prefetch=0,
        grid=(N, n_tiles),
        in_specs=[pl.BlockSpec((None, th, W, C), lambda n, t: (n, t, 0, 0)),
                  pl.BlockSpec((POOL_ROWS_PAD, th * W), lambda n, t: (0, t)),
                  pl.BlockSpec((C, width), lambda n, t: (0, 0)),
                  pl.BlockSpec((1, width), lambda n, t: (0, 0))],
        out_specs=pl.BlockSpec((None, POOL_ROWS_PAD, width),
                               lambda n, t: (n, 0, 0)),
        scratch_shapes=[pltpu.VMEM((POOL_ROWS_PAD, C), jnp.float32)])
    return pl.pallas_call(
        _pool_kernel_tiled, out_shape=out_shape, grid_spec=grid_spec,
        compiler_params=pltpu.CompilerParams(
            dimension_semantics=("parallel", "arbitrary"),
            vmem_limit_bytes=VMEM_LIMIT_BYTES),
        cost_estimate=cost,
    )(x_nhwc, mpool, w_all, b_all)


def _fuse_output(x_nhwc, mup, G, wx, out_dtype):
    N, H, W, C = x_nhwc.shape
    out_ch = wx.shape[1]
    th = _row_tile(H, W, C, x_nhwc.dtype.itemsize)
    n_tiles = H // th

    cost = pl.CostEstimate(
        flops=int(N * 2 * H * W * (C + G_ROWS_PAD) * out_ch),
        transcendentals=0,
        bytes_accessed=int(N * H * W * C * x_nhwc.dtype.itemsize
                           + H * W * G_ROWS_PAD * mup.dtype.itemsize
                           + N * G_ROWS_PAD * out_ch * G.dtype.itemsize
                           + C * out_ch * wx.dtype.itemsize
                           + N * H * W * out_ch * jnp.dtype(out_dtype).itemsize))

    return pl.pallas_call(
        _fuse_kernel,
        out_shape=jax.ShapeDtypeStruct((N, H, W, out_ch), out_dtype),
        grid_spec=pltpu.PrefetchScalarGridSpec(
            num_scalar_prefetch=0,
            grid=(N, n_tiles),
            in_specs=[pl.BlockSpec((None, th, W, C), lambda n, t: (n, t, 0, 0)),
                      pl.BlockSpec((th * W, G_ROWS_PAD), lambda n, t: (t, 0)),
                      pl.BlockSpec((None, G_ROWS_PAD, out_ch), lambda n, t: (n, 0, 0)),
                      pl.BlockSpec((C, out_ch), lambda n, t: (0, 0))],
            out_specs=pl.BlockSpec((None, th, W, out_ch),
                                   lambda n, t: (n, t, 0, 0))),
        compiler_params=pltpu.CompilerParams(
            dimension_semantics=("parallel", "parallel"),
            vmem_limit_bytes=VMEM_LIMIT_BYTES),
        cost_estimate=cost,
    )(x_nhwc, mup, G, wx)


# ------------------------------------------------- wrapper-level (tiny) math
def _transformer_block(p, tf):
    """PyTorch TransformerBlock(c, 8, 1).  p: (S, N, c) where S = pooled pixels
    and N = original batch (attention sequence), matching the module's
    flatten/transpose."""
    S, N, c = p.shape
    d = c // NUM_HEADS
    x0 = p + (p @ tf["Wl"] + tf["bl"])
    q = x0 @ tf["Wq"]
    k = x0 @ tf["Wk"]
    Q = (q @ tf["Wquery"]).reshape(S, N, NUM_HEADS, d)
    K = (k @ tf["Wkey"]).reshape(S, N, NUM_HEADS, d)
    V = (k @ tf["Wvalue"]).reshape(S, N, NUM_HEADS, d)
    scores = jnp.einsum("snhd,smhd->hsnm", Q, K) / (c ** 0.5)
    attn = jax.nn.softmax(scores, axis=-1)
    out = jnp.einsum("hsnm,smhd->snhd", attn, V).reshape(S, N, c)
    x1 = out[0] + x0                       # torch: self.ma(...)[0] + x
    x2 = (x1 @ tf["Wfc1"]) @ tf["Wfc2"] + x1
    return x2


def _forward(x_nchw, params):
    N, C, H, W = x_nchw.shape
    inter = C // 4
    # TODO(synk): if the surrounding model were NHWC end-to-end these two full
    # HBM-roundtrip transposes (input here, output at the bottom) disappear.
    x_nhwc = jnp.transpose(x_nchw, (0, 2, 3, 1))
    x_mxu = x_nhwc.astype(MXU_DTYPE)

    mpool = jnp.asarray(_build_pool_matrix(H, W)).astype(MXU_DTYPE)
    mup = jnp.asarray(_build_upsample_matrix(H, W)).astype(MXU_DTYPE)

    # Fold per-branch 1x1 conv + BN (inference / running-stats semantics) and
    # concatenate the four branches into one lane-dense (C, 4*inter) weight.
    # TODO(synk): training-mode BatchNorm batch statistics are not modeled.
    w_cols, b_cols = [], []
    for br in params["branches"]:
        bn = br["bn"]
        scale = bn["gamma"] / jnp.sqrt(bn["var"] + BN_EPS)
        w_cols.append(br["Wc"] * scale[None, :])
        b_cols.append((br["bc"] - bn["mean"]) * scale + bn["beta"])
    w_all = jnp.concatenate(w_cols, axis=1).astype(MXU_DTYPE)     # (C, 4*inter)
    b_all = jnp.concatenate(b_cols).reshape(1, -1).astype(jnp.float32)

    # Pallas kernel 1: pooling + all branch convs/BN/ReLU (lane-dense feat).
    feat_pooled = _pool_branch_features(x_mxu, mpool, w_all, b_all)  # (N,72,4I) f32

    # Fold the output conv + BN; split into the x slice and per-branch slices.
    bno = params["bn_out"]
    scale_o = bno["gamma"] / jnp.sqrt(bno["var"] + BN_EPS)
    Wo = params["Wo"] * scale_o[None, :]
    out_ch = Wo.shape[1]
    bias_fused = ((params["bo"] - bno["mean"]) * scale_o + bno["beta"]).reshape(1, -1)
    wx = Wo[:C].astype(MXU_DTYPE)

    # TODO(synk): the TransformerBlock branches (multi-head attention over the
    # batch axis on <=36 pooled pixels) run as plain JAX; the shapes are too
    # tiny / batch-coupled to be a useful TPU Pallas kernel.
    g_rows = []
    for gi, s in enumerate(POOL_SIZES):
        r0 = _GROUP_START[gi]
        f = feat_pooled[:, r0:r0 + s * s, gi * inter:(gi + 1) * inter]  # (N,s*s,I)
        p = jnp.transpose(f, (1, 0, 2))                                 # (S,N,I)
        tfo = _transformer_block(p, params["branches"][gi]["tf"])
        tfo = jnp.transpose(tfo, (1, 0, 2))                             # (N,S,I)
        w_br = Wo[C + gi * inter: C + (gi + 1) * inter]                 # (I,out)
        g_rows.append(jnp.einsum("nsi,io->nso", tfo, w_br))
    bias_row = jnp.broadcast_to(bias_fused[None], (N, 1, out_ch))       # bias in G
    G = jnp.concatenate(g_rows + [bias_row], axis=1)                    # (N,51,out)
    G = jnp.pad(G, ((0, 0), (0, G_ROWS_PAD - G.shape[1]), (0, 0))).astype(MXU_DTYPE)

    # Pallas kernel 2: fused upsample + concat + 1x1 output conv + BN + ReLU.
    out_nhwc = _fuse_output(x_mxu, mup, G, wx, x_nchw.dtype)
    return jnp.transpose(out_nhwc, (0, 3, 1, 2))


def pyramid_pooling_pallas(x_nchw, params):
    return _forward(x_nchw, params)


# ------------------------------------------------------- pure-JAX reference
def pyramid_pooling_reference(x_nchw, params):
    N, C, H, W = x_nchw.shape
    inter = C // 4
    xh = jnp.transpose(x_nchw, (0, 2, 3, 1))

    def bn_apply(z, bn):
        return (z - bn["mean"]) / jnp.sqrt(bn["var"] + BN_EPS) * bn["gamma"] + bn["beta"]

    feats = []
    for gi, s in enumerate(POOL_SIZES):
        br = params["branches"][gi]
        rows = []
        for i in range(s):                      # explicit adaptive-pool bins
            a0, a1 = (i * H) // s, _ceil_div((i + 1) * H, s)
            cols = []
            for j in range(s):
                b0, b1 = (j * W) // s, _ceil_div((j + 1) * W, s)
                cols.append(jnp.mean(xh[:, a0:a1, b0:b1, :], axis=(1, 2)))
            rows.append(jnp.stack(cols, axis=1))
        pooled = jnp.stack(rows, axis=1)                            # (N,s,s,C)
        z = jnp.einsum("nabc,ci->nabi", pooled, br["Wc"]) + br["bc"]
        z = jnp.maximum(bn_apply(z, br["bn"]), 0.0)                 # (N,s,s,I)
        p = jnp.transpose(z.reshape(N, s * s, inter), (1, 0, 2))
        t = _transformer_block(p, br["tf"])
        t = jnp.transpose(t, (1, 0, 2)).reshape(N, s, s, inter)
        Uh = jnp.asarray(_upsample_matrix_1d(H, s))
        Uw = jnp.asarray(_upsample_matrix_1d(W, s))
        feats.append(jnp.einsum("ha,wb,nabi->nhwi", Uh, Uw, t))
    cat = jnp.concatenate([xh] + feats, axis=-1)                    # (N,H,W,2C)
    z = jnp.einsum("nhwc,co->nhwo", cat, params["Wo"]) + params["bo"]
    z = jnp.maximum(bn_apply(z, params["bn_out"]), 0.0)
    return jnp.transpose(z, (0, 3, 1, 2))


# ---------------------------------------------------------------- parameters
def init_params(key, in_ch, out_ch):
    inter = in_ch // 4
    assert inter % NUM_HEADS == 0, "in_channels must be divisible by 32"
    keys = iter(jax.random.split(key, 80))

    def dense(shape, fan_in):
        return jax.random.normal(next(keys), shape, jnp.float32) / np.sqrt(fan_in)

    def bn(ch):
        return dict(gamma=1.0 + 0.1 * jax.random.normal(next(keys), (ch,), jnp.float32),
                    beta=0.1 * jax.random.normal(next(keys), (ch,), jnp.float32),
                    mean=0.1 * jax.random.normal(next(keys), (ch,), jnp.float32),
                    var=jax.random.uniform(next(keys), (ch,), jnp.float32, 0.5, 1.5))

    branches = []
    for _ in POOL_SIZES:
        tf = dict(Wl=dense((inter, inter), inter),
                  bl=0.1 * jax.random.normal(next(keys), (inter,), jnp.float32),
                  Wq=dense((inter, inter), inter), Wk=dense((inter, inter), inter),
                  Wquery=dense((inter, inter), inter), Wkey=dense((inter, inter), inter),
                  Wvalue=dense((inter, inter), inter),
                  Wfc1=dense((inter, inter), inter), Wfc2=dense((inter, inter), inter))
        branches.append(dict(Wc=dense((in_ch, inter), in_ch),       # (in, out) layout
                             bc=0.1 * jax.random.normal(next(keys), (inter,), jnp.float32),
                             bn=bn(inter), tf=tf))
    return dict(branches=branches,
                Wo=dense((2 * in_ch, out_ch), 2 * in_ch),
                bo=0.1 * jax.random.normal(next(keys), (out_ch,), jnp.float32),
                bn_out=bn(out_ch))


if __name__ == "__main__":
    key = jax.random.PRNGKey(0)
    kx, kp = jax.random.split(key)

    # in_channels must be divisible by 32 (inter = in/4 split across 8 heads);
    # 128 channels keeps every matmul / output store lane-dense on TPU.
    N, IN_CH, OUT_CH, H, W = 2, 128, 128, 16, 16
    x = jax.random.normal(kx, (N, IN_CH, H, W), jnp.float32)
    params = init_params(kp, IN_CH, OUT_CH)

    out = pyramid_pooling_pallas(x, params)
    out = jax.block_until_ready(out)
    assert out.shape == (N, OUT_CH, H, W), out.shape

    ref = pyramid_pooling_reference(x, params)
    # bf16 MXU inputs (f32 accumulation) vs. the pure-f32 reference.
    if not jnp.allclose(out, ref, atol=5e-2, rtol=5e-2):
        raise AssertionError(
            f"mismatch vs reference: max abs err = {float(jnp.max(jnp.abs(out - ref)))}")

    print("KERNEL_OK")
</pallas_src>

<mosaic_0001>
module attributes {stable_mosaic.version = 11 : i64} {
  func.func @_pool_kernel_single(%arg0: i32, %arg1: memref<1x16x16x128xbf16, #tpu.memory_space<vmem>>, %arg2: memref<72x256xbf16, #tpu.memory_space<vmem>>, %arg3: memref<128x128xbf16, #tpu.memory_space<vmem>>, %arg4: memref<1x128xf32, #tpu.memory_space<vmem>>, %arg5: memref<1x72x128xf32, #tpu.memory_space<vmem>>) attributes {dimension_semantics = [#tpu.dimension_semantics<parallel>], iteration_bounds = array<i64: 2>, scalar_prefetch = 0 : i64, scratch_operands = 0 : i64, tpu.core_type = #tpu.core_type<tc>, window_params = [{transform_indices = @transform_0, window_bounds = array<i64: 1, 16, 16, 128>}, {pipeline_mode = #tpu.pipeline_mode<synchronous>, transform_indices = @transform_1, window_bounds = array<i64: 72, 256>}, {pipeline_mode = #tpu.pipeline_mode<synchronous>, transform_indices = @transform_2, window_bounds = array<i64: 128, 128>}, {pipeline_mode = #tpu.pipeline_mode<synchronous>, transform_indices = @transform_3, window_bounds = array<i64: 1, 128>}, {transform_indices = @transform_4, window_bounds = array<i64: 1, 72, 128>}]} {
    %c0 = arith.constant 0 : index
    %c0_0 = arith.constant 0 : index
    %c0_1 = arith.constant 0 : index
    %c0_2 = arith.constant 0 : index
    %0 = vector.load %arg1[%c0, %c0_0, %c0_1, %c0_2] : memref<1x16x16x128xbf16, #tpu.memory_space<vmem>>, vector<1x16x16x128xbf16>
    %1 = vector.shape_cast %0 : vector<1x16x16x128xbf16> to vector<16x16x128xbf16>
    %2 = vector.shape_cast %1 : vector<16x16x128xbf16> to vector<256x128xbf16>
    %c0_3 = arith.constant 0 : index
    %c0_4 = arith.constant 0 : index
    %3 = vector.load %arg2[%c0_3, %c0_4] : memref<72x256xbf16, #tpu.memory_space<vmem>>, vector<72x256xbf16>
    %cst = arith.constant dense<0.000000e+00> : vector<72x128xf32>
    %4 = tpu.matmul %3, %2, %cst {dimension_numbers = #tpu.dot_dimension_numbers<[1], [0], [0], [1], [0, 0, 1, 1], [], []>} : vector<72x256xbf16>, vector<256x128xbf16>, vector<72x128xf32> -> vector<72x128xf32>
    %5 = arith.truncf %4 : vector<72x128xf32> to vector<72x128xbf16>
    %c0_5 = arith.constant 0 : index
    %c0_6 = arith.constant 0 : index
    %6 = vector.load %arg3[%c0_5, %c0_6] : memref<128x128xbf16, #tpu.memory_space<vmem>>, vector<128x128xbf16>
    %cst_7 = arith.constant dense<0.000000e+00> : vector<72x128xf32>
    %7 = tpu.matmul %5, %6, %cst_7 {dimension_numbers = #tpu.dot_dimension_numbers<[1], [0], [0], [1], [0, 0, 1, 1], [], []>} : vector<72x128xbf16>, vector<128x128xbf16>, vector<72x128xf32> -> vector<72x128xf32>
    %c0_8 = arith.constant 0 : index
    %c0_9 = arith.constant 0 : index
    %8 = vector.load %arg4[%c0_8, %c0_9] : memref<1x128xf32, #tpu.memory_space<vmem>>, vector<1x128xf32>
    %9 = vector.broadcast %8 : vector<1x128xf32> to vector<72x128xf32>
    %10 = arith.addf %7, %9 : vector<72x128xf32>
    %cst_10 = arith.constant 0.000000e+00 : f32
    %11 = vector.broadcast %cst_10 : f32 to vector<72x128xf32>
    %12 = arith.maximumf %10, %11 : vector<72x128xf32>
    %c0_11 = arith.constant 0 : index
    %c0_12 = arith.constant 0 : index
    %c0_13 = arith.constant 0 : index
    %13 = vector.load %arg5[%c0_11, %c0_12, %c0_13] : memref<1x72x128xf32, #tpu.memory_space<vmem>>, vector<1x72x128xf32>
    %14 = vector.shape_cast %13 : vector<1x72x128xf32> to vector<72x128xf32>
    %15 = vector.shape_cast %12 : vector<72x128xf32> to vector<1x72x128xf32>
    tpu.vector_store %arg5[%c0_11, %c0_12, %c0_13], %15 {strides = array<i32>} : memref<1x72x128xf32, #tpu.memory_space<vmem>>, vector<1x72x128xf32>,
    return
  }
  func.func @transform_0(%arg0: i32) -> (i32, i32, i32, i32) {
    %c0_i32 = arith.constant 0 : i32
    %c0_i32_0 = arith.constant 0 : i32
    %c0_i32_1 = arith.constant 0 : i32
    %c0_i32_2 = arith.constant 0 : i32
    return %arg0, %c0_i32, %c0_i32_0, %c0_i32_1 : i32, i32, i32, i32
  }
  func.func @transform_1(%arg0: i32) -> (i32, i32) {
    %c0_i32 = arith.constant 0 : i32
    %c0_i32_0 = arith.constant 0 : i32
    %c0_i32_1 = arith.constant 0 : i32
    return %c0_i32, %c0_i32_0 : i32, i32
  }
  func.func @transform_2(%arg0: i32) -> (i32, i32) {
    %c0_i32 = arith.constant 0 : i32
    %c0_i32_0 = arith.constant 0 : i32
    %c0_i32_1 = arith.constant 0 : i32
    return %c0_i32, %c0_i32_0 : i32, i32
  }
  func.func @transform_3(%arg0: i32) -> (i32, i32) {
    %c0_i32 = arith.constant 0 : i32
    %c0_i32_0 = arith.constant 0 : i32
    %c0_i32_1 = arith.constant 0 : i32
    return %c0_i32, %c0_i32_0 : i32, i32
  }
  func.func @transform_4(%arg0: i32) -> (i32, i32, i32) {
    %c0_i32 = arith.constant 0 : i32
    %c0_i32_0 = arith.constant 0 : i32
    %c0_i32_1 = arith.constant 0 : i32
    return %arg0, %c0_i32, %c0_i32_0 : i32, i32, i32
  }
}

</mosaic_0001>

<bundles_post_ra>
// kernel: tpu_custom_call.1
= control target key start
LH: loop header
LB: loop body
LE: loop exit
PB: predicated region body
PF: predicated region fallthrough
CT: control target
= control target key end

     0   :  { %9 = vsyncpa [#allocation3], 0  ;;  %s1468_s0 = inlined_call_operand.hbm [shape: bf16[2,16,16,128], index: 0, kind: input, shape index: {}]   ;;  %s1469_s1 = inlined_call_operand.hbm [shape: bf16[72,256], index: 1, kind: input, shape index: {}]   ;;  %s1470_s2 = inlined_call_operand.hbm [shape: bf16[128,128], index: 2, kind: input, shape index: {}]   ;;  %s1471_s3 = inlined_call_operand.vmem [shape: f32[1,128], index: 3, kind: input, shape index: {}]   ;;  %s1472_s4 = inlined_call_operand.hbm [shape: f32[2,72,128], index: 4, kind: output, shape index: {}]  }
   0x1   :  { %11 = vsyncpa [#allocation3 + $0x1], 0 }
   0x2   :  { %12 = vsyncpa [#allocation6], 0 }
   0x3   :  { %13 = vsyncpa [#allocation4], 0 }
   0x4   :  { %15 = vsyncpa [#allocation4 + $0x1], 0  ;;  %s1222_s15 = smov 0   ;;  %s1224_s16 = smov 0  }
   0x5   :  { %s1226_s17 = smov 0   ;;  %s1228_s18 = smov 0  }
   0x6 LB: > { %s1243_s19 = sadd.s32 4294967295, %s1183_s18   ;;  %s774_s20 = sadd.s32 4294967294, %s1183_s18   ;;  %s1183_s18 = sphi %s1228_s18, %s1494_s18   ;;  %s1179_s17 = sphi %s1226_s17, %s1493_s17   ;;  %s1175_s16 = sphi %s1224_s16, %s1492_s16   ;;  %s1171_s15 = sphi %s1222_s15, %s1491_s15  }
   0x7   : > { %p41_p0 = scmp.ne.s32.totalorder %s1175_s16, %s1171_s15  ;;  %p1473_p1 = scmp.eq.s32.totalorder %s1243_s19, 0 }
   0x8   : > { %p134_p3 = scmp.eq.s32.totalorder %s774_s20, 1  ;;  %p775_p5 = scmp.ge.s32.totalorder %s1183_s18, 1 }
   0x9   : > { %p1252_p4 = por %p1473_p1, %p41_p0  ;;  %p141_p7 = scmp.lt.s32.totalorder %s1183_s18, 3 }
   0xa   : > { %p1257_p6 = por %p134_p3, %p41_p0  ;;  %s1185_s24 = smov [#allocation5]  }
   0xb   : > { %s1477_s21 = scalar_select %p1252_p4, 1, 0 }
   0xc   : > { %s1478_s22 = scalar_select %p1257_p6, 1, 0 }
   0xd   : > { %p1262_p8 = pnand %p775_p5, %p141_p7  ;;  %s153_s25 = sshll.u32 %s1185_s24, 4  ;;  %s154_s25 = int_to_ptr.vmem [resolvable:$true] %s153_s25 }
   0xe   : > { %s1186_s27 = smov [#allocation7]   ;;  %s1046_s29 = scalar_lea.vmem %s154_s25, 1152 }
   0xf   : > { %s1479_s23 = scalar_select %p1262_p8, 1, 0 }
  0x10   : > { %p934_p9 = pneg %p1262_p8  ;;  %s166_s28 = sshll.u32 %s1186_s27, 4  ;;  %s167_s28 = int_to_ptr.vmem [resolvable:$true] %s166_s28 }
  0x11   : > { %p1047_p13 = scmp.ne.s32.totalorder %s154_s25, %s1046_s29  ;;  %p1054_p5 = scmp.lt.s32.totalorder %s154_s25, %s154_s25 }
  0x12   : > { %p1271_p11 = pnand %p934_p9, %p1473_p1  ;;  %p1055_p7 = scmp.lt.s32.totalorder %s1046_s29, %s1046_s29 }
  0x14   : > { %p1037_p12 = pneg %p1271_p11  ;;  %p1056_p10 = por %p1055_p7, %p1054_p5 }
  0x16   : > { %p1049_p0 = pnand %p1047_p13, %p1037_p12 }
  0x18   : > { %p1050_p3 = pneg %p1049_p0 }
  0x1a   : > { %p1057_p9 = pnand %p1056_p10, %p1050_p3 }
  0x1c   : > { %1060 = shalt.err (!%p1057_p9)
}
  0x1d   : > { %s1187_s30 = smov 128   ;;  %s1188_s5 = smov 8  }
  0x1e   : > { %937 = dma.hbm_to_vmem [thread:$0]  (!%p1271_p11), %s1469_s1, 1152, %s154_s25, [#allocation6], %s1187_s30, %s1187_s30, %s1188_s5  }
  0x1f   : > { %s1072_s8 = scalar_lea.vmem %s167_s28, 1024  ;;  %p1080_p2 = scmp.lt.s32.totalorder %s167_s28, %s167_s28 }
  0x20   : > { %p1073_p1 = scmp.ne.s32.totalorder %s167_s28, %s1072_s8  ;;  %p1081_p6 = scmp.lt.s32.totalorder %s1072_s8, %s1072_s8 }
  0x22   : > { %p1075_p13 = pnand %p1073_p1, %p1037_p12  ;;  %p1082_p5 = por %p1081_p6, %p1080_p2 }
  0x24   : > { %p1076_p0 = pneg %p1075_p13 }
  0x26   : > { %p1083_p10 = pnand %p1082_p5, %p1076_p0 }
  0x28   : > { %1086 = shalt.err (!%p1083_p10)
}
  0x29   : > { %s1189_s9 = smov 64   ;;  %s1190_s10 = smov 4  }
  0x2a   : > { %940 = dma.hbm_to_vmem [thread:$0]  (!%p1271_p11), %s1470_s2, 1024, %s167_s28, [#allocation6], %s1189_s9, %s1189_s9, %s1190_s10  }
  0x2b   : > { %s1297_s13 = sadd.s32 1, %s1183_s18   ;;  %s28_s20 = sadd.s32 1, %s1179_s17 }
  0x2c   : > { %s25_s14 = ssub.s32 %s1183_s18, %s1297_s13  ;;  %p35_p2 = scmp.ne.s32.totalorder %s1179_s17, %s1175_s16 }
  0x2d   : > { %p26_p1 = scmp.eq.s32.totalorder %s25_s14, 0  ;;  %p36_p6 = scmp.eq.s32.totalorder %s1183_s18, 0 }
  0x2e   : > { %p1481_p3 = scmp.eq.s32.totalorder %s1243_s19, 1  ;;  %p951_p9 = scmp.lt.s32.totalorder %s1183_s18, 2 }
  0x2f   : > { %s1306_s24 = scalar_select %p26_p1, %s1179_s17, %s28_s20  }
  0x30   : > { %p37_p12 = por %p36_p6, %p35_p2  ;;  %p1310_p7 = por %p1481_p3, %p35_p2 }
  0x31   : > { %s183_s26 = sand.u32 1, %s1179_s17   ;;  %s824_s28 = sshll.u32 %s1183_s18, 11 }
  0x32   : > { %s1482_s25 = scalar_select %p1310_p7, 1, 0 }
  0x33   : > { %s779_s27 = sshll.u32 %s183_s26, 7  ;;  %s1320_s5 = scalar_lea.hbm %s1468_s0, %s824_s28 }
  0x34   : > { %s187_s6 = scalar_lea.vmem [#allocation2], %s779_s27  ;;  %p1324_p11 = pnand %p951_p9, %p37_p12 }
  0x35   : > { %s194_s7 = sshll.u32 %s187_s6, 4  ;;  %s1328_s11 = scalar_lea.sflag [#allocation3], %s183_s26  ;;  %s1322_s7 = int_to_ptr.vmem [resolvable:$true] %s194_s7 }
  0x36   : > { %s1087_s12 = scalar_lea.hbm %s1320_s5, 2048  ;;  %p1089_p0 = pneg %p1324_p11 }
  0x37   : > { %p1088_p13 = scmp.ne.s32.totalorder %s1320_s5, %s1087_s12  ;;  %s1092_s27 = scalar_lea.hbm %s1468_s0, 4096 }
  0x38   : > { %p1093_p1 = scmp.lt.s32.totalorder %s1320_s5, %s1468_s0  ;;  %p1094_p2 = scmp.lt.s32.totalorder %s1092_s27, %s1087_s12 }
  0x39   : > { %p1090_p5 = pnand %p1089_p0, %p1088_p13 }
  0x3a   : > { %p1095_p6 = por %p1094_p2, %p1093_p1 }
  0x3b   : > { %p1091_p10 = pneg %p1090_p5 }
  0x3d   : > { %p1096_p12 = pnand %p1095_p6, %p1091_p10 }
  0x3f   : > { %1099 = shalt.err (!%p1096_p12)
}
  0x40   : > { %s1100_s26 = scalar_lea.vmem %s1322_s7, 2048  ;;  %s1191_s30 = smov [#allocation2]  }
  0x41   : > { %p1101_p3 = scmp.ne.s32.totalorder %s1322_s7, %s1100_s26  ;;  %s1105_s6 = sshll.u32 %s1191_s30, 4  ;;  %s1106_s6 = int_to_ptr.vmem [resolvable:$false] %s1105_s6 }
  0x42   : > { %s1107_s14 = scalar_lea.vmem %s1106_s6, 4096  ;;  %p1108_p5 = scmp.lt.s32.totalorder %s1322_s7, %s1106_s6 }
  0x43   : > { %p1103_p9 = pnand %p1101_p3, %p1089_p0  ;;  %p1109_p7 = scmp.lt.s32.totalorder %s1107_s14, %s1100_s26 }
  0x45   : > { %p1104_p13 = pneg %p1103_p9  ;;  %p1110_p4 = por %p1109_p7, %p1108_p5 }
  0x47   : > { %p1111_p8 = pnand %p1110_p4, %p1104_p13 }
  0x49   : > { %1114 = shalt.err (!%p1111_p8)
}
  0x4a   : > { %944 = dma.hbm_to_vmem [thread:$0]  (!%p1324_p11), %s1320_s5, 2048, %s1322_s7, %s1328_s11, %s1189_s9, %s1189_s9, %s1190_s10  }
  0x4b   : > { %p1484_p0 = scmp.ne.s32.totalorder %s1479_s23, 0 }
  0x4c   : > { %s1355_s12 = sand.u32 (!%p1484_p0), 1, %s1175_s16   ;;  %p1485_p4 = scmp.ne.s32.totalorder (!%p1484_p0), %s1477_s21, 0 }
  0x4d   : > { %206 = sbr.rel (%p1484_p0) target bundleno = 566 (0x236), region = 36  ;;  %s783_s20 = sshll.u32 (!%p1484_p0), %s1355_s12, 7 }
  0x4e   : > { %s209_s27 = scalar_lea.sflag (!%p1484_p0), [#allocation3], %s1355_s12  ;;  %s1359_s28 = scalar_lea.vmem (!%p1484_p0), [#allocation2], %s783_s20 }
  0x52   : > { %1158 = dma.done.wait (%p1485_p4), %s209_s27, 2048  }
  0x53   : > { %1160 = vsyncadd (%p1485_p4), %s209_s27, 4294965248  ;;  %p1486_p8 = scmp.eq.s32.totalorder %s1243_s19, 0 }
  0x55   : > { %1162 = dma.done.wait (%p1486_p8), [#allocation6], 2176   ;;  %p1487_p7 = pmov %p1486_p8 }
  0x56   : > { %v1192_v0 = vmov 0.0   ;;  %v997_v1 = vld [vmem:[%s1359_s28 + $0x78] sm:$0xff]   ;;  %v999_v3 = vld [vmem:[%s1359_s28 + $0x70] sm:$0xff]   ;;  %v1001_v5 = vld [vmem:[%s1359_s28 + $0x68] sm:$0xff]   ;;  %vm1193_vm0 = vmmov 0   ;;  %s920_s21 = smul.u32 72, %s1355_s12 }
  0x57   : > { %1164 = vsyncadd (%p1487_p7), [#allocation6], 4294965120  ;;  %884 = vmatprep.subr.bf16.mxu1 %v1192_v0  ;;  %v998_v2 = vld [vmem:[%s1359_s28 + $0x38] sm:$0xff]   ;;  %825 = vmatprep.subr.bf16.mxu0 %v997_v1  ;;  %v1000_v4 = vld [vmem:[%s1359_s28 + $0x30] sm:$0xff]   ;;  %s921_s5 = smul.u32 1152, %s1243_s19  ;;  %s669_s19 = scalar_lea.sflag [#allocation4], %s1355_s12 }
  0x58   : > { %826 = vmatpush3.bf16.msra.mxu0 %v998_v2  ;;  %v1002_v6 = vld [vmem:[%s1359_s28 + $0x28] sm:$0xff]   ;;  %v1003_v7 = vld [vmem:[%s1359_s28 + $0x60] sm:$0xff]   ;;  %v1005_v9 = vld [vmem:[%s1359_s28 + $0x58] sm:$0xff]   ;;  %900 = vmatprep.mubr.msk.bf16.mxu1 %vm1193_vm0, %v1192_v0  ;;  %s1407_s10 = scalar_lea.vmem [#allocation8], %s920_s21  ;;  %p1488_p10 = scmp.ne.s32.totalorder %s1482_s25, 0 }
  0x59   : > { %827 = vmatprep.subr.bf16.mxu0 %v999_v3  ;;  %v1004_v8 = vld [vmem:[%s1359_s28 + $0x20] sm:$0xff]   ;;  %v1006_v10 = vld [vmem:[%s1359_s28 + $0x18] sm:$0xff]   ;;  %v1007_v11 = vld [vmem:[%s1359_s28 + $0x50] sm:$0xff]   ;;  %s682_s7 = sshll.u32 %s1407_s10, 4  ;;  %s1422_s29 = scalar_lea.hbm %s1472_s4, %s921_s5  ;;  %s1424_s7 = int_to_ptr.vmem [resolvable:$true] %s682_s7 }
  0x5a   : > { %v1015_v12 = vld [vmem:[#allocation5 + $0x4] ss:$8 sps:$4 sm:$0xff]   ;;  %v1008_v13 = vld [vmem:[%s1359_s28 + $0x10] sm:$0xff]   ;;  %v1028_v18 = vld [vmem:[#allocation7 + $0x30] sm:$0xff]   ;;  %s1115_s26 = scalar_lea.vmem %s1424_s7, 1152  ;;  %s1194_s30 = smov [#allocation8]  }
  0x5b   : > { %462 = vmatprep.mubr.bf16.mxu0 %v1015_v12  ;;  %v1009_v14 = vld [vmem:[%s1359_s28 + $0x48] sm:$0xff]   ;;  %v1027_v16 = vld [vmem:[#allocation7 + $0x38] sm:$0xff]   ;;  %v1029_v20 = vld [vmem:[#allocation7 + $0x28] sm:$0xff]   ;;  %p1116_p11 = scmp.ne.s32.totalorder %s1424_s7, %s1115_s26  ;;  %s1119_s6 = sshll.u32 %s1194_s30, 4  ;;  %s1120_s6 = int_to_ptr.vmem [resolvable:$false] %s1119_s6 }
  0x5c   : > { %828 = vmatpush3.bf16.msra.mxu0 %v1000_v4  ;;  %v1010_v15 = vld [vmem:[%s1359_s28 + $0x8] sm:$0xff]   ;;  %v1011_v17 = vld [vmem:[%s1359_s28 + $0x40] sm:$0xff]   ;;  %885 = vmatpush3.bf16.msra.mxu1 %v1027_v16  ;;  %v1016_v22 = vld [vmem:[#allocation5 + $0x14] ss:$8 sps:$4 sm:$0xff]   ;;  %s1121_s14 = scalar_lea.vmem %s1120_s6, 2304  ;;  %p1122_p6 = scmp.lt.s32.totalorder %s1424_s7, %s1120_s6 }
  0x5d   : > { %829 = vmatprep.subr.bf16.mxu0 %v1001_v5  ;;  %886 = vmatprep.subr.bf16.mxu1 %v1192_v0  ;;  %v1012_v19 = vld [vmem:[%s1359_s28] sm:$0xff]   ;;  %v1030_v23 = vld [vmem:[#allocation7 + $0x20] sm:$0xff]   ;;  %v1018_v25 = vld [vmem:[#allocation5 + $0x10] ss:$8 sps:$4 sm:$0xff]   ;;  %p1117_p1 = pnand %p1116_p11, %p1488_p10  ;;  %p1123_p12 = scmp.lt.s32.totalorder %s1121_s14, %s1115_s26 }
  0x5e   : > { %v1013_v21 = vld [vmem:[#allocation5] ss:$8 sps:$4 sm:$0xff]   ;;  %v1019_v26 = vld [vmem:[#allocation5 + $0x24] ss:$8 sps:$4 sm:$0xff]   ;;  %v1022_v28 = vld [vmem:[#allocation5 + $0x34] ss:$8 sps:$4 sm:$0xff]  }
  0x5f   : > { %v1031_v24 = vld [vmem:[#allocation7 + $0x18] sm:$0xff]   ;;  %v1024_v30 = vld [vmem:[#allocation5 + $0x30] ss:$8 sps:$4 sm:$0xff]   ;;  %v1034_v35 = vld [vmem:[#allocation7] sm:$0xff]   ;;  %p1118_p2 = pneg %p1117_p1  ;;  %p1124_p3 = por %p1123_p12, %p1122_p6 }
  0x60   : > { %830 = vmatpush3.bf16.msra.mxu0 %v1002_v6  ;;  %887 = vmatpush3.bf16.msra.mxu1 %v1028_v18  ;;  %v1021_v27 = vld [vmem:[#allocation5 + $0x20] ss:$8 sps:$4 sm:$0xff]   ;;  %v1032_v33 = vld [vmem:[#allocation7 + $0x10] sm:$0xff]   ;;  %v1033_v34 = vld [vmem:[#allocation7 + $0x8] sm:$0xff]  }
  0x61   : > { %831 = vmatprep.subr.bf16.mxu0 %v1003_v7  ;;  %888 = vmatprep.subr.bf16.mxu1 %v1192_v0  ;;  %v286_v29 = vld [vmem:[#allocation5 + $0x40] sm:$0xff]  ;;  %p1125_p9 = pnand %p1124_p3, %p1118_p2 }
  0x62   : > { %v795_v31 = vcombine.high %v286_v29, %v286_v29  ;;  %v794_v32 = vcombine.low %v286_v29, %v286_v29  ;;  %v812_v7 = vld [vmem:[%s1471_s3] ss:$0 sm:$0xff] }
  0x64   : > { %832 = vmatpush3.bf16.msra.mxu0 %v1004_v8  ;;  %889 = vmatpush3.bf16.msra.mxu1 %v1029_v20 }
  0x65   : > { %833 = vmatprep.subr.bf16.mxu0 %v1005_v9  ;;  %890 = vmatprep.subr.bf16.mxu1 %v1192_v0 }
  0x68   : > { %834 = vmatpush3.bf16.msra.mxu0 %v1006_v10  ;;  %891 = vmatpush3.bf16.msra.mxu1 %v1030_v23 }
  0x69   : > { %835 = vmatprep.subr.bf16.mxu0 %v1007_v11  ;;  %892 = vmatprep.subr.bf16.mxu1 %v1192_v0 }
  0x6c   : > { %836 = vmatpush3.bf16.msra.mxu0 %v1008_v13  ;;  %893 = vmatpush3.bf16.msra.mxu1 %v1031_v24 }
  0x6d   : > { %837 = vmatprep.subr.bf16.mxu0 %v1009_v14  ;;  %894 = vmatprep.subr.bf16.mxu1 %v1192_v0 }
  0x70   : > { %838 = vmatpush3.bf16.msra.mxu0 %v1010_v15  ;;  %895 = vmatpush3.bf16.msra.mxu1 %v1032_v33 }
  0x71   : > { %839 = vmatprep.subr.bf16.mxu0 %v1011_v17  ;;  %896 = vmatprep.subr.bf16.mxu1 %v1192_v0 }
  0x74   : > { %840 = vmatpush3.bf16.msra.mxu0 %v1012_v19  ;;  %897 = vmatpush3.bf16.msra.mxu1 %v1033_v34 }
  0x75   : > { %898 = vmatprep.subr.bf16.mxu1 %v1192_v0 }
  0x77   : > { %463 = vmatmul.mubr.bf16.vlgmr.msra.gmra.mxu0 %v1013_v21 }
  0x78   : > { %470 = vmatprep.mubr.bf16.mxu0 %v1016_v22  ;;  %899 = vmatpush3.bf16.msra.mxu1 %v1034_v35 }
  0x7f   : > { %471 = vmatmul.mubr.bf16.gmra.mxu0 %v1018_v25 }
  0x80   : > { %478 = vmatprep.mubr.bf16.mxu0 %v1019_v26 }
  0x87   : > { %479 = vmatmul.mubr.bf16.gmra.mxu0 %v1021_v27 }
  0x88   : > { %486 = vmatprep.mubr.bf16.mxu0 %v1022_v28 }
  0x8f   : > { %487 = vmatmul.mubr.bf16.gmra.mxu0 %v1024_v30 }
  0x90   : > { %494 = vmatprep.mubr.bf16.mxu0 %v795_v31 }
  0x97   : > { %495 = vmatmul.mubr.bf16.gmra.mxu0 %v794_v32 }
 0x137   : > { %v841_v36 = vpop.f32.mrf.mxu0 }
 0x139   : > { %v842_v37 = vpop.f32.mrf.mxu0 }
 0x13a   : > { %v843_v40 = vadd.f32 %v842_v37, %v841_v36 }
 0x13b   : > { %v844_v38 = vpop.f32.mrf.mxu0 }
 0x13d   : > { %v845_v39 = vpop.f32.mrf.mxu0 }
 0x13e   : > { %v846_v41 = vadd.f32 %v845_v39, %v844_v38 }
 0x13f   : > { %v847_v42 = vpop.f32.mrf.mxu0 }
 0x140   : > { %v502_v43 = vpack.c.bf16 %v846_v41, %v843_v40 }
 0x141   : > { %v848_v44 = vpop.f32.mrf.mxu0 }
 0x142   : > { %901 = vmatmul.mubr.bf16.vlgmr.msra.gmra.mxu1 %v502_v43  ;;  %v849_v47 = vadd.f32 %v848_v44, %v847_v42 }
 0x143   : > { %v850_v45 = vpop.f32.mrf.mxu0  ;;  %904 = vmatprep.mubr.msk.bf16.mxu1 %vm1193_vm0, %v1192_v0 }
 0x145   : > { %v851_v46 = vpop.f32.mrf.mxu0 }
 0x146   : > { %v852_v48 = vadd.f32 %v851_v46, %v850_v45 }
 0x147   : > { %v853_v49 = vpop.f32.mrf.mxu0 }
 0x148   : > { %v503_v50 = vpack.c.bf16 %v852_v48, %v849_v47 }
 0x149   : > { %v854_v51 = vpop.f32.mrf.mxu0 }
 0x14a   : > { %905 = vmatmul.mubr.bf16.gmra.mxu1 %v503_v50  ;;  %v855_v54 = vadd.f32 %v854_v51, %v853_v49 }
 0x14b   : > { %v856_v52 = vpop.f32.mrf.mxu0  ;;  %908 = vmatprep.mubr.msk.bf16.mxu1 %vm1193_vm0, %v1192_v0 }
 0x14d   : > { %v857_v53 = vpop.f32.mrf.mxu0 }
 0x14e   : > { %v858_v55 = vadd.f32 %v857_v53, %v856_v52 }
 0x14f   : > { %v859_v56 = vpop.f32.mrf.mxu0 }
 0x150   : > { %v504_v57 = vpack.c.bf16 %v858_v55, %v855_v54 }
 0x151   : > { %v860_v58 = vpop.f32.mrf.mxu0 }
 0x152   : > { %909 = vmatmul.mubr.bf16.gmra.mxu1 %v504_v57  ;;  %v861_v61 = vadd.f32 %v860_v58, %v859_v56 }
 0x153   : > { %v862_v59 = vpop.f32.mrf.mxu0  ;;  %912 = vmatprep.mubr.msk.bf16.mxu1 %vm1193_vm0, %v1192_v0 }
 0x155   : > { %v863_v60 = vpop.f32.mrf.mxu0 }
 0x156   : > { %v864_v62 = vadd.f32 %v863_v60, %v862_v59 }
 0x157   : > { %v865_v63 = vpop.f32.mrf.mxu0 }
 0x158   : > { %v505_v1 = vpack.c.bf16 %v864_v62, %v861_v61 }
 0x159   : > { %v866_v2 = vpop.f32.mrf.mxu0 }
 0x15a   : > { %913 = vmatmul.mubr.bf16.gmra.mxu1 %v505_v1  ;;  %v867_v4 = vadd.f32 %v866_v2, %v865_v63 }
 0x15b   : > { %v868_v3 = vpop.f32.mrf.mxu0  ;;  %916 = vmatprep.mubr.msk.bf16.mxu1 %vm1193_vm0, %v1192_v0 }
 0x15c   : > { %v506_v6 = vpack.c.bf16 %v867_v4, %v867_v4 }
 0x15d   : > { %v869_v5 = vpop.f32.mrf.mxu0 }
 0x162   : > { %917 = vmatmul.mubr.bf16.gmra.mxu1 %v506_v6 }
 0x202   : > { %v612_v8 = vpop.f32.mrf.mxu1 }
 0x203   : > { %v613_v9 = vadd.f32 %v812_v7, %v612_v8 }
 0x204   : > { %v902_v10 = vpop.f32.mrf.mxu1 }
 0x205   : > { %v650_v11 = vmax.f32 %v613_v9, 0.0 }
 0x206   : > { %v615_v12 = vpop.f32.mrf.mxu1 }
 0x207   : > { %659 = vst [vmem:[%s1407_s10] sm:$0xff] %v650_v11  ;;  %v616_v0 = vadd.f32 %v812_v7, %v615_v12 }
 0x208   : > { %v903_v13 = vpop.f32.mrf.mxu1 }
 0x209   : > { %v651_v14 = vmax.f32 %v616_v0, 0.0 }
 0x20a   : > { %v620_v15 = vpop.f32.mrf.mxu1 }
 0x20b   : > { %660 = vst [vmem:[%s1407_s10 + $0x8] sm:$0xff] %v651_v14  ;;  %v621_v16 = vadd.f32 %v812_v7, %v620_v15 }
 0x20c   : > { %v906_v17 = vpop.f32.mrf.mxu1 }
 0x20d   : > { %v652_v18 = vmax.f32 %v621_v16, 0.0 }
 0x20e   : > { %v623_v19 = vpop.f32.mrf.mxu1 }
 0x20f   : > { %661 = vst [vmem:[%s1407_s10 + $0x10] sm:$0xff] %v652_v18  ;;  %v624_v20 = vadd.f32 %v812_v7, %v623_v19 }
 0x210   : > { %v907_v21 = vpop.f32.mrf.mxu1 }
 0x211   : > { %v653_v22 = vmax.f32 %v624_v20, 0.0 }
 0x212   : > { %v628_v23 = vpop.f32.mrf.mxu1 }
 0x213   : > { %662 = vst [vmem:[%s1407_s10 + $0x18] sm:$0xff] %v653_v22  ;;  %v629_v24 = vadd.f32 %v812_v7, %v628_v23 }
 0x214   : > { %v910_v25 = vpop.f32.mrf.mxu1 }
 0x215   : > { %v654_v26 = vmax.f32 %v629_v24, 0.0 }
 0x216   : > { %v631_v27 = vpop.f32.mrf.mxu1 }
 0x217   : > { %663 = vst [vmem:[%s1407_s10 + $0x20] sm:$0xff] %v654_v26  ;;  %v632_v28 = vadd.f32 %v812_v7, %v631_v27 }
 0x218   : > { %v911_v29 = vpop.f32.mrf.mxu1 }
 0x219   : > { %v655_v30 = vmax.f32 %v632_v28, 0.0 }
 0x21a   : > { %v636_v31 = vpop.f32.mrf.mxu1 }
 0x21b   : > { %664 = vst [vmem:[%s1407_s10 + $0x28] sm:$0xff] %v655_v30  ;;  %v637_v32 = vadd.f32 %v812_v7, %v636_v31 }
 0x21c   : > { %v914_v33 = vpop.f32.mrf.mxu1 }
 0x21d   : > { %v656_v34 = vmax.f32 %v637_v32, 0.0 }
 0x21e   : > { %v639_v35 = vpop.f32.mrf.mxu1 }
 0x21f   : > { %665 = vst [vmem:[%s1407_s10 + $0x30] sm:$0xff] %v656_v34  ;;  %v640_v36 = vadd.f32 %v812_v7, %v639_v35 }
 0x220   : > { %v915_v37 = vpop.f32.mrf.mxu1 }
 0x221   : > { %v657_v38 = vmax.f32 %v640_v36, 0.0 }
 0x222   : > { %v644_v39 = vpop.f32.mrf.mxu1 }
 0x223   : > { %666 = vst [vmem:[%s1407_s10 + $0x38] sm:$0xff] %v657_v38  ;;  %v645_v40 = vadd.f32 %v812_v7, %v644_v39 }
 0x224   : > { %v918_v41 = vpop.f32.mrf.mxu1 }
 0x225   : > { %v658_v42 = vmax.f32 %v645_v40, 0.0 }
 0x226   : > { %v647_v43 = vpop.f32.mrf.mxu1 }
 0x227   : > { %667 = vst [vmem:[%s1407_s10 + $0x40] sm:$0xff] %v658_v42 }
 0x228   : > { %v919_v44 = vpop.f32.mrf.mxu1 }
 0x229   : > { %1128 = shalt.err (!%p1125_p9)
}
 0x22a   : > { %s1129_s20 = scalar_lea.hbm %s1422_s29, 1152  ;;  %s1133_s21 = scalar_lea.hbm %s1472_s4, 2304 }
 0x22b   : > { %p1130_p13 = scmp.ne.s32.totalorder %s1422_s29, %s1129_s20  ;;  %p1134_p4 = scmp.lt.s32.totalorder %s1422_s29, %s1472_s4 }
 0x22c   : > { %p1135_p8 = scmp.lt.s32.totalorder %s1133_s21, %s1129_s20 }
 0x22d   : > { %p1131_p5 = pnand %p1130_p13, %p1488_p10 }
 0x22e   : > { %p1136_p7 = por %p1135_p8, %p1134_p4 }
 0x22f   : > { %p1132_p0 = pneg %p1131_p5 }
 0x231   : > { %p1137_p11 = pnand %p1136_p7, %p1132_p0 }
 0x233   : > { %1140 = shalt.err (!%p1137_p11)
}
 0x234   : > { %s1195_s10 = smov 128   ;;  %s1196_s5 = smov 8  }
 0x235   : > { %932 = dma.vmem_to_hbm [thread:$0]  (%p1488_p10), %s1424_s7, 1152, %s1422_s29, %s669_s19, %s1195_s10, %s1195_s10, %s1196_s5  }
 0x236 PF: > { %s697_s8 = sand.u32 1, %s1171_s15   ;;  %p1489_p1 = scmp.ne.s32.totalorder %s1478_s22, 0 }
 0x237   : > { %p1490_p2 = scmp.ge.s32.totalorder %s1183_s18, 2  ;;  %s698_s11 = scalar_lea.sflag [#allocation4], %s697_s8 }
 0x239   : > { %p946_p6 = pnand %p1490_p2, %p1489_p1 }
 0x23b   : > { %p947_p12 = pneg %p946_p6 }
 0x23d   : > { %1166 = dma.done.wait (%p947_p12), %s698_s11, 1152  }
 0x23e   : > { %1168 = vsyncadd (%p947_p12), %s698_s11, 4294966144  ;;  %p18_p3 = scmp.ge.s32.totalorder %s1297_s13, 4   ;;  %s1491_s15 = smov %s1175_s16 }
 0x23f   : > { %s1492_s16 = smov %s1179_s17  ;;  %s1493_s17 = smov %s1306_s24 }
 0x240   : > { %s1494_s18 = smov %s1297_s13  ;;  %20 = sbr.rel (!%p18_p3) target bundleno = 6 (0x6), region = 89 }
 0x245   :  { %703 = vsyncpa [#allocation3], 1 }
 0x246   :  { %705 = vsyncpa [#allocation3 + $0x1], 1 }
 0x247   :  { %706 = vsyncpa [#allocation6], 1 }
 0x248   :  { %707 = vsyncpa [#allocation4], 1 }
 0x249   :  { %709 = vsyncpa [#allocation4 + $0x1], 1 }

</bundles_post_ra>
